<compile_context>
chip_gen: v7x
topology: tpu7x:2x2x1
jax: 0.10.0
libtpu: 0.0.40
codegen_flags: <defaults>
</compile_context>

<pallas_src>
import jax
import jax.numpy as jnp
from jax.experimental import pallas as pl
from jax.experimental.pallas import tpu as pltpu


def _network_kernel(x_ref,
                    wa1_ref, ba1_ref, wa2_ref, ba2_ref, wa3_ref, ba3_ref,
                    w1_ref, b1_ref, w2_ref, b2_ref, w3_ref, b3_ref,
                    out_ref):
    x = x_ref[...].astype(jnp.float32)

    # ---- attention branch: Linear -> ReLU -> Linear -> ReLU -> Linear -> Softmax
    a1 = jnp.dot(x, wa1_ref[...], preferred_element_type=jnp.float32) + ba1_ref[...]
    a1 = jnp.maximum(a1, 0.0)
    a2 = jnp.dot(a1, wa2_ref[...], preferred_element_type=jnp.float32) + ba2_ref[...]
    a2 = jnp.maximum(a2, 0.0)
    logits = jnp.dot(a2, wa3_ref[...], preferred_element_type=jnp.float32) + ba3_ref[...]

    # numerically-stable softmax (exact divide: approx reciprocal broke the
    # 1e-4 correctness check, and this kernel is not VALU-bound)
    m = jnp.max(logits, axis=-1, keepdims=True)
    e = jnp.exp(logits - m)
    att = e / jnp.sum(e, axis=-1, keepdims=True)

    # ---- gated state
    s = x * att

    # ---- main trunk: h1 -> relu -> h2 -> relu -> h3
    f1 = jnp.dot(s, w1_ref[...], preferred_element_type=jnp.float32) + b1_ref[...]
    f1 = jnp.maximum(f1, 0.0)
    f2 = jnp.dot(f1, w2_ref[...], preferred_element_type=jnp.float32) + b2_ref[...]
    f2 = jnp.maximum(f2, 0.0)
    out = jnp.dot(f2, w3_ref[...], preferred_element_type=jnp.float32) + b3_ref[...]

    out_ref[...] = out.astype(out_ref.dtype)


def _round_up(x, m):
    return ((x + m - 1) // m) * m


def network_forward(state, params, *, block_b=512):
    """state: (B, n_input) float32. params: dict of weights (in, out) and biases (1, dim).

    Tiles the batch dimension with a 1-D grid; weights stay VMEM-resident
    across grid steps. Works for any B (pads to a tile multiple, slices back).
    """
    B, n_input = state.shape
    n_output = params["w3"].shape[1]

    # Near-equal 8-aligned batch tiles, capped at block_b, minimizing padding.
    b8 = _round_up(B, 8)
    n_tiles = pl.cdiv(b8, block_b)
    tb = _round_up(pl.cdiv(b8, n_tiles), 8)
    Bp = tb * n_tiles
    if Bp != B:
        state = jnp.pad(state, ((0, Bp - B), (0, 0)))
    grid = (n_tiles,)

    def _resident(arr):
        # Full-array block, same block index every grid step -> stays in VMEM.
        ndim = arr.ndim
        return pl.BlockSpec(arr.shape, lambda i, _n=ndim: (0,) * _n)

    weight_args = (
        params["wa1"], params["ba1"],
        params["wa2"], params["ba2"],
        params["wa3"], params["ba3"],
        params["w1"], params["b1"],
        params["w2"], params["b2"],
        params["w3"], params["b3"],
    )

    in_specs = [pl.BlockSpec((tb, n_input), lambda i: (i, 0))]
    in_specs += [_resident(a) for a in weight_args]

    out = pl.pallas_call(
        _network_kernel,
        out_shape=jax.ShapeDtypeStruct((Bp, n_output), jnp.float32),
        grid=grid,
        in_specs=in_specs,
        out_specs=pl.BlockSpec((tb, n_output), lambda i: (i, 0)),
        compiler_params=pltpu.CompilerParams(
            dimension_semantics=("parallel",)),
    )(state, *weight_args)

    return out[:B] if Bp != B else out


# ---------------- deterministic parameter construction ----------------

def _xavier_uniform(key, fan_in, fan_out, gain):
    # returns weight in (in, out) layout
    limit = gain * jnp.sqrt(6.0 / (fan_in + fan_out))
    return jax.random.uniform(key, (fan_in, fan_out), jnp.float32, -limit, limit)


def _pt_default_linear(key, fan_in, fan_out):
    # PyTorch default Linear init: U(-1/sqrt(fan_in), 1/sqrt(fan_in))
    kw, kb = jax.random.split(key)
    bound = 1.0 / jnp.sqrt(jnp.array(fan_in, jnp.float32))
    w = jax.random.uniform(kw, (fan_in, fan_out), jnp.float32, -bound, bound)
    b = jax.random.uniform(kb, (1, fan_out), jnp.float32, -bound, bound)
    return w, b


def make_params(key, n_input, n_features, n_output):
    keys = jax.random.split(key, 8)
    relu_gain = jnp.sqrt(2.0)   # nn.init.calculate_gain('relu')
    lin_gain = 1.0              # nn.init.calculate_gain('linear')

    # attention MLP (PyTorch default init)
    wa1, ba1 = _pt_default_linear(keys[0], n_input, n_features)
    wa2, ba2 = _pt_default_linear(keys[1], n_features, n_features)
    wa3, ba3 = _pt_default_linear(keys[2], n_features, n_input)

    # trunk: xavier-uniform weights (as in __init__), default-init biases
    w1 = _xavier_uniform(keys[3], n_input, n_features, relu_gain)
    _, b1 = _pt_default_linear(keys[4], n_input, n_features)
    w2 = _xavier_uniform(keys[5], n_features, n_features, relu_gain)
    _, b2 = _pt_default_linear(keys[6], n_features, n_features)
    w3 = _xavier_uniform(keys[7], n_features, n_output, lin_gain)
    b3 = jnp.zeros((1, n_output), jnp.float32)

    return dict(wa1=wa1, ba1=ba1, wa2=wa2, ba2=ba2, wa3=wa3, ba3=ba3,
                w1=w1, b1=b1, w2=w2, b2=b2, w3=w3, b3=b3)


def network_reference(state, p):
    """Pure-JAX reference for correctness check."""
    x = state.astype(jnp.float32)
    a = jnp.maximum(x @ p["wa1"] + p["ba1"], 0.0)
    a = jnp.maximum(a @ p["wa2"] + p["ba2"], 0.0)
    logits = a @ p["wa3"] + p["ba3"]
    att = jax.nn.softmax(logits, axis=-1)
    s = x * att
    f1 = jnp.maximum(s @ p["w1"] + p["b1"], 0.0)
    f2 = jnp.maximum(f1 @ p["w2"] + p["b2"], 0.0)
    return f2 @ p["w3"] + p["b3"]


if __name__ == "__main__":
    key = jax.random.PRNGKey(0)
    k_state, k_params = jax.random.split(key)

    batch = 8
    n_input = 16       # input_shape[-1]
    n_features = 32
    n_output = 4       # output_shape[0]

    state = jax.random.normal(k_state, (batch, n_input), jnp.float32)
    params = make_params(k_params, n_input, n_features, n_output)

    out = network_forward(state, params)
    out = jax.block_until_ready(out)

    ref = network_reference(state, params)
    assert out.shape == (batch, n_output)
    assert jnp.allclose(out, ref, atol=1e-4, rtol=1e-4), "mismatch vs reference"

    # also exercise the tiled path (batch > one tile, non-multiple of 8)
    big_state = jax.random.normal(k_state, (1037, n_input), jnp.float32)
    big_out = jax.block_until_ready(network_forward(big_state, params, block_b=512))
    big_ref = network_reference(big_state, params)
    assert big_out.shape == (1037, n_output)
    assert jnp.allclose(big_out, big_ref, atol=1e-4, rtol=1e-4), "mismatch (tiled) vs reference"

    print("KERNEL_OK")
</pallas_src>

<mosaic_0001>
module attributes {stable_mosaic.version = 11 : i64} {
  func.func @_network_kernel(%arg0: i32, %arg1: memref<8x16xf32, #tpu.memory_space<vmem>>, %arg2: memref<16x32xf32, #tpu.memory_space<vmem>>, %arg3: memref<1x32xf32, #tpu.memory_space<vmem>>, %arg4: memref<32x32xf32, #tpu.memory_space<vmem>>, %arg5: memref<1x32xf32, #tpu.memory_space<vmem>>, %arg6: memref<32x16xf32, #tpu.memory_space<vmem>>, %arg7: memref<1x16xf32, #tpu.memory_space<vmem>>, %arg8: memref<16x32xf32, #tpu.memory_space<vmem>>, %arg9: memref<1x32xf32, #tpu.memory_space<vmem>>, %arg10: memref<32x32xf32, #tpu.memory_space<vmem>>, %arg11: memref<1x32xf32, #tpu.memory_space<vmem>>, %arg12: memref<32x4xf32, #tpu.memory_space<vmem>>, %arg13: memref<1x4xf32, #tpu.memory_space<vmem>>, %arg14: memref<8x4xf32, #tpu.memory_space<vmem>>) attributes {dimension_semantics = [#tpu.dimension_semantics<parallel>], iteration_bounds = array<i64: 1>, scalar_prefetch = 0 : i64, scratch_operands = 0 : i64, tpu.core_type = #tpu.core_type<tc>, window_params = [{transform_indices = @transform_0, window_bounds = array<i64: 8, 16>}, {pipeline_mode = #tpu.pipeline_mode<synchronous>, transform_indices = @transform_1, window_bounds = array<i64: 16, 32>}, {pipeline_mode = #tpu.pipeline_mode<synchronous>, transform_indices = @transform_2, window_bounds = array<i64: 1, 32>}, {pipeline_mode = #tpu.pipeline_mode<synchronous>, transform_indices = @transform_3, window_bounds = array<i64: 32, 32>}, {pipeline_mode = #tpu.pipeline_mode<synchronous>, transform_indices = @transform_4, window_bounds = array<i64: 1, 32>}, {pipeline_mode = #tpu.pipeline_mode<synchronous>, transform_indices = @transform_5, window_bounds = array<i64: 32, 16>}, {pipeline_mode = #tpu.pipeline_mode<synchronous>, transform_indices = @transform_6, window_bounds = array<i64: 1, 16>}, {pipeline_mode = #tpu.pipeline_mode<synchronous>, transform_indices = @transform_7, window_bounds = array<i64: 16, 32>}, {pipeline_mode = #tpu.pipeline_mode<synchronous>, transform_indices = @transform_8, window_bounds = array<i64: 1, 32>}, {pipeline_mode = #tpu.pipeline_mode<synchronous>, transform_indices = @transform_9, window_bounds = array<i64: 32, 32>}, {pipeline_mode = #tpu.pipeline_mode<synchronous>, transform_indices = @transform_10, window_bounds = array<i64: 1, 32>}, {pipeline_mode = #tpu.pipeline_mode<synchronous>, transform_indices = @transform_11, window_bounds = array<i64: 32, 4>}, {pipeline_mode = #tpu.pipeline_mode<synchronous>, transform_indices = @transform_12, window_bounds = array<i64: 1, 4>}, {transform_indices = @transform_13, window_bounds = array<i64: 8, 4>}]} {
    %c0 = arith.constant 0 : index
    %c0_0 = arith.constant 0 : index
    %0 = vector.load %arg1[%c0, %c0_0] : memref<8x16xf32, #tpu.memory_space<vmem>>, vector<8x16xf32>
    %c0_1 = arith.constant 0 : index
    %c0_2 = arith.constant 0 : index
    %1 = vector.load %arg2[%c0_1, %c0_2] : memref<16x32xf32, #tpu.memory_space<vmem>>, vector<16x32xf32>
    %cst = arith.constant dense<0.000000e+00> : vector<8x32xf32>
    %2 = tpu.matmul %0, %1, %cst {dimension_numbers = #tpu.dot_dimension_numbers<[1], [0], [0], [1], [0, 0, 1, 1], [], []>} : vector<8x16xf32>, vector<16x32xf32>, vector<8x32xf32> -> vector<8x32xf32>
    %c0_3 = arith.constant 0 : index
    %c0_4 = arith.constant 0 : index
    %3 = vector.load %arg3[%c0_3, %c0_4] : memref<1x32xf32, #tpu.memory_space<vmem>>, vector<1x32xf32>
    %4 = vector.broadcast %3 : vector<1x32xf32> to vector<8x32xf32>
    %5 = arith.addf %2, %4 : vector<8x32xf32>
    %cst_5 = arith.constant 0.000000e+00 : f32
    %6 = vector.broadcast %cst_5 : f32 to vector<8x32xf32>
    %7 = arith.maximumf %5, %6 : vector<8x32xf32>
    %c0_6 = arith.constant 0 : index
    %c0_7 = arith.constant 0 : index
    %8 = vector.load %arg4[%c0_6, %c0_7] : memref<32x32xf32, #tpu.memory_space<vmem>>, vector<32x32xf32>
    %cst_8 = arith.constant dense<0.000000e+00> : vector<8x32xf32>
    %9 = tpu.matmul %7, %8, %cst_8 {dimension_numbers = #tpu.dot_dimension_numbers<[1], [0], [0], [1], [0, 0, 1, 1], [], []>} : vector<8x32xf32>, vector<32x32xf32>, vector<8x32xf32> -> vector<8x32xf32>
    %c0_9 = arith.constant 0 : index
    %c0_10 = arith.constant 0 : index
    %10 = vector.load %arg5[%c0_9, %c0_10] : memref<1x32xf32, #tpu.memory_space<vmem>>, vector<1x32xf32>
    %11 = vector.broadcast %10 : vector<1x32xf32> to vector<8x32xf32>
    %12 = arith.addf %9, %11 : vector<8x32xf32>
    %cst_11 = arith.constant 0.000000e+00 : f32
    %13 = vector.broadcast %cst_11 : f32 to vector<8x32xf32>
    %14 = arith.maximumf %12, %13 : vector<8x32xf32>
    %c0_12 = arith.constant 0 : index
    %c0_13 = arith.constant 0 : index
    %15 = vector.load %arg6[%c0_12, %c0_13] : memref<32x16xf32, #tpu.memory_space<vmem>>, vector<32x16xf32>
    %cst_14 = arith.constant dense<0.000000e+00> : vector<8x16xf32>
    %16 = tpu.matmul %14, %15, %cst_14 {dimension_numbers = #tpu.dot_dimension_numbers<[1], [0], [0], [1], [0, 0, 1, 1], [], []>} : vector<8x32xf32>, vector<32x16xf32>, vector<8x16xf32> -> vector<8x16xf32>
    %c0_15 = arith.constant 0 : index
    %c0_16 = arith.constant 0 : index
    %17 = vector.load %arg7[%c0_15, %c0_16] : memref<1x16xf32, #tpu.memory_space<vmem>>, vector<1x16xf32>
    %18 = vector.broadcast %17 : vector<1x16xf32> to vector<8x16xf32>
    %19 = arith.addf %16, %18 : vector<8x16xf32>
    %cst_17 = arith.constant dense<0xFF800000> : vector<8xf32>
    %20 = vector.multi_reduction <maximumf>, %19, %cst_17 [1] : vector<8x16xf32> to vector<8xf32>
    %21 = vector.shape_cast %20 : vector<8xf32> to vector<8x1xf32>
    %22 = vector.broadcast %21 : vector<8x1xf32> to vector<8x16xf32>
    %23 = arith.subf %19, %22 : vector<8x16xf32>
    %24 = math.exp %23 : vector<8x16xf32>
    %cst_18 = arith.constant dense<0.000000e+00> : vector<8xf32>
    %25 = vector.multi_reduction <add>, %24, %cst_18 [1] : vector<8x16xf32> to vector<8xf32>
    %26 = vector.shape_cast %25 : vector<8xf32> to vector<8x1xf32>
    %27 = vector.broadcast %26 : vector<8x1xf32> to vector<8x16xf32>
    %28 = arith.divf %24, %27 : vector<8x16xf32>
    %29 = arith.mulf %0, %28 : vector<8x16xf32>
    %c0_19 = arith.constant 0 : index
    %c0_20 = arith.constant 0 : index
    %30 = vector.load %arg8[%c0_19, %c0_20] : memref<16x32xf32, #tpu.memory_space<vmem>>, vector<16x32xf32>
    %cst_21 = arith.constant dense<0.000000e+00> : vector<8x32xf32>
    %31 = tpu.matmul %29, %30, %cst_21 {dimension_numbers = #tpu.dot_dimension_numbers<[1], [0], [0], [1], [0, 0, 1, 1], [], []>} : vector<8x16xf32>, vector<16x32xf32>, vector<8x32xf32> -> vector<8x32xf32>
    %c0_22 = arith.constant 0 : index
    %c0_23 = arith.constant 0 : index
    %32 = vector.load %arg9[%c0_22, %c0_23] : memref<1x32xf32, #tpu.memory_space<vmem>>, vector<1x32xf32>
    %33 = vector.broadcast %32 : vector<1x32xf32> to vector<8x32xf32>
    %34 = arith.addf %31, %33 : vector<8x32xf32>
    %cst_24 = arith.constant 0.000000e+00 : f32
    %35 = vector.broadcast %cst_24 : f32 to vector<8x32xf32>
    %36 = arith.maximumf %34, %35 : vector<8x32xf32>
    %c0_25 = arith.constant 0 : index
    %c0_26 = arith.constant 0 : index
    %37 = vector.load %arg10[%c0_25, %c0_26] : memref<32x32xf32, #tpu.memory_space<vmem>>, vector<32x32xf32>
    %cst_27 = arith.constant dense<0.000000e+00> : vector<8x32xf32>
    %38 = tpu.matmul %36, %37, %cst_27 {dimension_numbers = #tpu.dot_dimension_numbers<[1], [0], [0], [1], [0, 0, 1, 1], [], []>} : vector<8x32xf32>, vector<32x32xf32>, vector<8x32xf32> -> vector<8x32xf32>
    %c0_28 = arith.constant 0 : index
    %c0_29 = arith.constant 0 : index
    %39 = vector.load %arg11[%c0_28, %c0_29] : memref<1x32xf32, #tpu.memory_space<vmem>>, vector<1x32xf32>
    %40 = vector.broadcast %39 : vector<1x32xf32> to vector<8x32xf32>
    %41 = arith.addf %38, %40 : vector<8x32xf32>
    %cst_30 = arith.constant 0.000000e+00 : f32
    %42 = vector.broadcast %cst_30 : f32 to vector<8x32xf32>
    %43 = arith.maximumf %41, %42 : vector<8x32xf32>
    %c0_31 = arith.constant 0 : index
    %c0_32 = arith.constant 0 : index
    %44 = vector.load %arg12[%c0_31, %c0_32] : memref<32x4xf32, #tpu.memory_space<vmem>>, vector<32x4xf32>
    %cst_33 = arith.constant dense<0.000000e+00> : vector<8x4xf32>
    %45 = tpu.matmul %43, %44, %cst_33 {dimension_numbers = #tpu.dot_dimension_numbers<[1], [0], [0], [1], [0, 0, 1, 1], [], []>} : vector<8x32xf32>, vector<32x4xf32>, vector<8x4xf32> -> vector<8x4xf32>
    %c0_34 = arith.constant 0 : index
    %c0_35 = arith.constant 0 : index
    %46 = vector.load %arg13[%c0_34, %c0_35] : memref<1x4xf32, #tpu.memory_space<vmem>>, vector<1x4xf32>
    %47 = vector.broadcast %46 : vector<1x4xf32> to vector<8x4xf32>
    %48 = arith.addf %45, %47 : vector<8x4xf32>
    %c0_36 = arith.constant 0 : index
    %c0_37 = arith.constant 0 : index
    %49 = vector.load %arg14[%c0_36, %c0_37] : memref<8x4xf32, #tpu.memory_space<vmem>>, vector<8x4xf32>
    tpu.vector_store %arg14[%c0_36, %c0_37], %48 {strides = array<i32>} : memref<8x4xf32, #tpu.memory_space<vmem>>, vector<8x4xf32>,
    return
  }
  func.func @transform_0(%arg0: i32) -> (i32, i32) {
    %c0_i32 = arith.constant 0 : i32
    %c0_i32_0 = arith.constant 0 : i32
    return %arg0, %c0_i32 : i32, i32
  }
  func.func @transform_1(%arg0: i32) -> (i32, i32) {
    %c0_i32 = arith.constant 0 : i32
    %c0_i32_0 = arith.constant 0 : i32
    %c0_i32_1 = arith.constant 0 : i32
    return %c0_i32, %c0_i32_0 : i32, i32
  }
  func.func @transform_2(%arg0: i32) -> (i32, i32) {
    %c0_i32 = arith.constant 0 : i32
    %c0_i32_0 = arith.constant 0 : i32
    %c0_i32_1 = arith.constant 0 : i32
    return %c0_i32, %c0_i32_0 : i32, i32
  }
  func.func @transform_3(%arg0: i32) -> (i32, i32) {
    %c0_i32 = arith.constant 0 : i32
    %c0_i32_0 = arith.constant 0 : i32
    %c0_i32_1 = arith.constant 0 : i32
    return %c0_i32, %c0_i32_0 : i32, i32
  }
  func.func @transform_4(%arg0: i32) -> (i32, i32) {
    %c0_i32 = arith.constant 0 : i32
    %c0_i32_0 = arith.constant 0 : i32
    %c0_i32_1 = arith.constant 0 : i32
    return %c0_i32, %c0_i32_0 : i32, i32
  }
  func.func @transform_5(%arg0: i32) -> (i32, i32) {
    %c0_i32 = arith.constant 0 : i32
    %c0_i32_0 = arith.constant 0 : i32
    %c0_i32_1 = arith.constant 0 : i32
    return %c0_i32, %c0_i32_0 : i32, i32
  }
  func.func @transform_6(%arg0: i32) -> (i32, i32) {
    %c0_i32 = arith.constant 0 : i32
    %c0_i32_0 = arith.constant 0 : i32
    %c0_i32_1 = arith.constant 0 : i32
    return %c0_i32, %c0_i32_0 : i32, i32
  }
  func.func @transform_7(%arg0: i32) -> (i32, i32) {
    %c0_i32 = arith.constant 0 : i32
    %c0_i32_0 = arith.constant 0 : i32
    %c0_i32_1 = arith.constant 0 : i32
    return %c0_i32, %c0_i32_0 : i32, i32
  }
  func.func @transform_8(%arg0: i32) -> (i32, i32) {
    %c0_i32 = arith.constant 0 : i32
    %c0_i32_0 = arith.constant 0 : i32
    %c0_i32_1 = arith.constant 0 : i32
    return %c0_i32, %c0_i32_0 : i32, i32
  }
  func.func @transform_9(%arg0: i32) -> (i32, i32) {
    %c0_i32 = arith.constant 0 : i32
    %c0_i32_0 = arith.constant 0 : i32
    %c0_i32_1 = arith.constant 0 : i32
    return %c0_i32, %c0_i32_0 : i32, i32
  }
  func.func @transform_10(%arg0: i32) -> (i32, i32) {
    %c0_i32 = arith.constant 0 : i32
    %c0_i32_0 = arith.constant 0 : i32
    %c0_i32_1 = arith.constant 0 : i32
    return %c0_i32, %c0_i32_0 : i32, i32
  }
  func.func @transform_11(%arg0: i32) -> (i32, i32) {
    %c0_i32 = arith.constant 0 : i32
    %c0_i32_0 = arith.constant 0 : i32
    %c0_i32_1 = arith.constant 0 : i32
    return %c0_i32, %c0_i32_0 : i32, i32
  }
  func.func @transform_12(%arg0: i32) -> (i32, i32) {
    %c0_i32 = arith.constant 0 : i32
    %c0_i32_0 = arith.constant 0 : i32
    %c0_i32_1 = arith.constant 0 : i32
    return %c0_i32, %c0_i32_0 : i32, i32
  }
  func.func @transform_13(%arg0: i32) -> (i32, i32) {
    %c0_i32 = arith.constant 0 : i32
    %c0_i32_0 = arith.constant 0 : i32
    return %arg0, %c0_i32 : i32, i32
  }
}

</mosaic_0001>

<bundles_post_ra>
// kernel: tpu_custom_call.1
= control target key start
LH: loop header
LB: loop body
LE: loop exit
PB: predicated region body
PF: predicated region fallthrough
CT: control target
= control target key end

     0   :  { %18 = vsyncpa [#allocation3], 0  ;;  %s999_s0 = inlined_call_operand.hbm [shape: f32[8,16], index: 0, kind: input, shape index: {}]   ;;  %s1000_s1 = inlined_call_operand.vmem [shape: f32[16,32], index: 1, kind: input, shape index: {}]   ;;  %s1001_s2 = inlined_call_operand.vmem [shape: f32[1,32], index: 2, kind: input, shape index: {}]   ;;  %s1002_s3 = inlined_call_operand.vmem [shape: f32[32,32], index: 3, kind: input, shape index: {}]   ;;  %s1003_s4 = inlined_call_operand.vmem [shape: f32[1,32], index: 4, kind: input, shape index: {}]   ;;  %s1004_s5 = inlined_call_operand.vmem [shape: f32[32,16], index: 5, kind: input, shape index: {}]   ;;  %s1005_s6 = inlined_call_operand.vmem [shape: f32[1,16], index: 6, kind: input, shape index: {}]   ;;  %s1006_s7 = inlined_call_operand.hbm [shape: f32[16,32], index: 7, kind: input, shape index: {}]   ;;  %s1007_s8 = inlined_call_operand.vmem [shape: f32[1,32], index: 8, kind: input, shape index: {}]   ;;  %s1008_s9 = inlined_call_operand.vmem [shape: f32[32,32], index: 9, kind: input, shape index: {}]   ;;  %s1009_s10 = inlined_call_operand.vmem [shape: f32[1,32], index: 10, kind: input, shape index: {}]   ;;  %s1010_s11 = inlined_call_operand.vmem [shape: f32[32,4], index: 11, kind: input, shape index: {}]   ;;  %s1011_s12 = inlined_call_operand.vmem [shape: f32[1,4], index: 12, kind: input, shape index: {}]   ;;  %s1012_s13 = inlined_call_operand.vmem [shape: f32[8,4], index: 13, kind: output, shape index: {}]  }
   0x1   :  { %19 = vsyncpa [#allocation5], 0  ;;  %s782_s25 = smov [#allocation2]   ;;  %s783_s27 = smov [#allocation4]  }
   0x2   :  { %s26_s26 = sshll.u32 %s782_s25, 4  ;;  %s47_s28 = sshll.u32 %s783_s27, 4  ;;  %s27_s26 = int_to_ptr.vmem [resolvable:$true] %s26_s26  ;;  %s859_s28 = int_to_ptr.vmem [resolvable:$true] %s47_s28 }
   0x3   :  { %s734_s14 = scalar_lea.hbm %s999_s0, 128 }
   0x4   :  { %p735_p0 = scmp.ne.s32.totalorder %s999_s0, %s734_s14  ;;  %p738_p1 = scmp.lt.u32.totalorder %s734_s14, %s999_s0 }
   0x6   :  { %p740_p2 = pnand %p738_p1, %p735_p0 }
   0x8   :  { %743 = shalt.err (!%p740_p2)
}
   0x9   :  { %s744_s19 = scalar_lea.vmem %s27_s26, 128  ;;  %p749_p4 = scmp.lt.s32.totalorder %s27_s26, %s27_s26 }
   0xa   :  { %p745_p3 = scmp.ne.s32.totalorder %s27_s26, %s744_s19  ;;  %p750_p5 = scmp.lt.s32.totalorder %s744_s19, %s744_s19 }
   0xc   :  { %p751_p6 = por %p750_p5, %p749_p4 }
   0xe   :  { %p752_p7 = pnand %p751_p6, %p745_p3 }
  0x10   :  { %755 = shalt.err (!%p752_p7)
}
  0x11   :  { %29 = dma.hbm_to_vmem [thread:$0]  %s999_s0, 128, %s27_s26, [#allocation3]  }
  0x12   :  { %s756_s24 = scalar_lea.hbm %s1006_s7, 256 }
  0x13   :  { %p757_p8 = scmp.ne.s32.totalorder %s1006_s7, %s756_s24  ;;  %p760_p9 = scmp.lt.u32.totalorder %s756_s24, %s1006_s7 }
  0x15   :  { %p762_p10 = pnand %p760_p9, %p757_p8 }
  0x17   :  { %765 = shalt.err (!%p762_p10)
}
  0x18   :  { %s766_s14 = scalar_lea.vmem %s859_s28, 256  ;;  %p771_p12 = scmp.lt.s32.totalorder %s859_s28, %s859_s28 }
  0x19   :  { %p767_p11 = scmp.ne.s32.totalorder %s859_s28, %s766_s14  ;;  %p772_p13 = scmp.lt.s32.totalorder %s766_s14, %s766_s14 }
  0x1b   :  { %p773_p0 = por %p772_p13, %p771_p12 }
  0x1d   :  { %p774_p1 = pnand %p773_p0, %p767_p11 }
  0x1f   :  { %777 = shalt.err (!%p774_p1)
}
  0x20   :  { %s784_s0 = smov 128   ;;  %s785_s26 = smov 8  }
  0x21   :  { %53 = dma.hbm_to_vmem [thread:$0]  %s1006_s7, 256, %s859_s28, [#allocation5], %s784_s0, %s784_s0, %s785_s26  }
  0x22   :  { %778 = dma.done.wait [#allocation3], 128  }
  0x23   :  { %779 = vsyncadd [#allocation3], 4294967168 }
  0x24   :  { %780 = dma.done.wait [#allocation5], 256  }
  0x25   :  { %781 = vsyncadd [#allocation5], 4294967040  ;;  %v786_v0 = vmov 0.0|0.0   ;;  %vm787_vm0 = vmmov 0   ;;  %v788_v1 = vmov 0.0   ;;  %v71_v2 = vld [vmem:[%s1000_s1] sm:$0xff] }
  0x26   :  { %693 = vmatprep.subr.bf16.mxu0 %v786_v0  ;;  %639 = vmatprep.mubr.msk.f32.mxu0 %vm787_vm0, %v788_v1  ;;  %v72_v3 = vld [vmem:[%s1000_s1 + $0x8] sm:$0xff]  ;;  %v155_v5 = vld [vmem:[%s1002_s3] sm:$0xff]  ;;  %vm80_vm1 = vcmask 130048   ;;  %v157_v9 = vld [vmem:[%s1002_s3 + $0x10] sm:$0xff]  ;;  %vm166_vm2 = vcmask 261120   ;;  %vm589_vm3 = vcmask 31744  }
  0x27   :  { %696 = vmatprep.subr.bf16.mxu1 %v786_v0  ;;  %650 = vmatprep.mubr.msk.f32.mxu1 %vm787_vm0, %v788_v1  ;;  %v694_v4 = vpack.c.bf16 %v72_v3, %v71_v2  ;;  %v156_v6 = vld [vmem:[%s1002_s3 + $0x8] sm:$0xff]  ;;  %v908_v8 = vld [vmem:[#allocation2] sm:$0xff]  ;;  %v158_v10 = vld [vmem:[%s1002_s3 + $0x18] sm:$0xff] }
  0x28   :  { %v697_v7 = vpack.c.bf16 %v156_v6, %v155_v5  ;;  %v700_v11 = vpack.c.bf16 %v158_v10, %v157_v9  ;;  %v241_v12 = vld [vmem:[%s1004_s5] sm:$0xff]  ;;  %v242_v13 = vld [vmem:[%s1004_s5 + $0x8] sm:$0xff]  ;;  %v243_v20 = vld [vmem:[%s1004_s5 + $0x10] sm:$0xff] }
  0x29   :  { %695 = vmatpush3.bf16.msra.mxu0 %v694_v4  ;;  %v703_v14 = vpack.c.bf16 %v242_v13, %v241_v12  ;;  %v597_v15 = vld [vmem:[%s1001_s2] ss:$0 sm:$0xff]  ;;  %v244_v21 = vld [vmem:[%s1004_s5 + $0x18] sm:$0xff]  ;;  %v337_v38 = vld [vmem:[#allocation4] sm:$0xff] }
  0x2a   :  { %698 = vmatpush3.bf16.msra.mxu1 %v697_v7  ;;  %702 = vmatprep.subr.bf16.mxu0 %v786_v0  ;;  %v706_v22 = vpack.c.bf16 %v244_v21, %v243_v20  ;;  %v599_v23 = vld [vmem:[%s1003_s4] ss:$0 sm:$0xff]  ;;  %v338_v39 = vld [vmem:[#allocation4 + $0x8] sm:$0xff]  ;;  %v421_v42 = vld [vmem:[%s1008_s9 + $0x8] sm:$0xff] }
  0x2b   :  { %699 = vmatprep.subr.bf16.mxu1 %v786_v0  ;;  %v601_v28 = vld [vmem:[%s1005_s6] ss:$0 sm:$0xff]  ;;  %v709_v40 = vpack.c.bf16 %v338_v39, %v337_v38  ;;  %v422_v48 = vld [vmem:[%s1008_s9 + $0x10] sm:$0xff]  ;;  %v423_v49 = vld [vmem:[%s1008_s9 + $0x18] sm:$0xff] }
  0x2c   :  { %640 = vmatmul.mubr.msk.f32.vlgmr.msra.gmra.mrb[0].mxu0 %vm80_vm1, %v908_v8  ;;  %v420_v41 = vld [vmem:[%s1008_s9] sm:$0xff]  ;;  %v715_v50 = vpack.c.bf16 %v423_v49, %v422_v48  ;;  %v506_v52 = vld [vmem:[%s1010_s11 + $0x8] sm:$0xff]  ;;  %v507_v59 = vld [vmem:[%s1010_s11 + $0x10] sm:$0xff] }
  0x2d   :  { %661 = vmatprep.mubr.msk.f32.mxu0 %vm787_vm0, %v788_v1  ;;  %704 = vmatpush3.bf16.msra.mxu0 %v703_v14  ;;  %v712_v43 = vpack.c.bf16 %v421_v42, %v420_v41  ;;  %v505_v51 = vld [vmem:[%s1010_s11] sm:$0xff]  ;;  %v508_v60 = vld [vmem:[%s1010_s11 + $0x18] sm:$0xff] }
  0x2e   :  { %701 = vmatpush3.bf16.msra.mxu1 %v700_v11  ;;  %705 = vmatprep.subr.bf16.mxu0 %v786_v0  ;;  %v718_v53 = vpack.c.bf16 %v506_v52, %v505_v51  ;;  %v603_v54 = vld [vmem:[%s1007_s8] ss:$0 sm:$0xff]  ;;  %v721_v61 = vpack.c.bf16 %v508_v60, %v507_v59 }
  0x2f   :  { %708 = vmatprep.subr.bf16.mxu1 %v786_v0  ;;  %v605_v62 = vld [vmem:[%s1009_s10] ss:$0 sm:$0xff] }
  0x30   :  { %v607_v3 = vld [vmem:[%s1011_s12] ss:$0 sm:$0xff] }
  0x31   :  { %707 = vmatpush3.bf16.msra.mxu0 %v706_v22 }
  0x32   :  { %711 = vmatprep.subr.bf16.mxu0 %v786_v0 }
  0xff   :  { %v150_v16 = vpop.f32.mrb[0].mxu0 }
 0x100   :  { %v151_v17 = vadd.f32 %v597_v15, %v150_v16  ;;  %v641_v18 = vpop.f32.mrb[1].mxu0 }
 0x102   :  { %v154_v19 = vmax.f32 %v151_v17, 0.0 }
 0x104   :  { %651 = vmatmul.mubr.msk.f32.vlgmr.msra.gmra.mrb[0].mxu1 %vm166_vm2, %v154_v19 }
 0x105   :  { %668 = vmatprep.mubr.msk.f32.mxu1 %vm787_vm0, %v788_v1  ;;  %710 = vmatpush3.bf16.msra.mxu1 %v709_v40 }
 0x106   :  { %717 = vmatprep.subr.bf16.mxu1 %v786_v0 }
 0x1d7   :  { %v236_v24 = vpop.f32.mrb[0].mxu1 }
 0x1d8   :  { %v237_v25 = vadd.f32 %v599_v23, %v236_v24  ;;  %v652_v26 = vpop.f32.mrb[1].mxu1 }
 0x1da   :  { %v240_v27 = vmax.f32 %v237_v25, 0.0 }
 0x1dc   :  { %662 = vmatmul.mubr.msk.f32.vlgmr.msra.gmra.mrb[2].mxu0 %vm166_vm2, %v240_v27 }
 0x1dd   :  { %679 = vmatprep.mubr.msk.f32.mxu0 %vm787_vm0, %v788_v1  ;;  %713 = vmatpush3.bf16.msra.mxu0 %v712_v43 }
 0x1de   :  { %714 = vmatprep.subr.bf16.mxu0 %v786_v0 }
 0x1e1   :  { %716 = vmatpush3.bf16.msra.mxu0 %v715_v50 }
 0x2af   :  { %v321_v29 = vpop.f32.mrb[2].mxu0 }
 0x2b0   :  { %v322_v30 = vadd.f32 %v601_v28, %v321_v29  ;;  %v663_v31 = vpop.f32.mrb[3].mxu0 }
 0x2b2   :  { %v325_v32 = vsel %vm80_vm1, %v322_v30, -inf }
 0x2b3   :  { %326 = vmax.xlane.f32.xlu0 %v325_v32 }
 0x340   :  { %v327_v33 = vpop.xlane.xlu0 %326 }
 0x341   :  { %v328_v34 = vsub.f32 %v322_v30, %v327_v33 }
 0x343   :  { %v329_v35 = vmul.f32 1.442695, %v328_v34 }
 0x345   :  { %730 = vpow2.f32 %v329_v35 }
 0x34f   :  { %v731_v36 = vpop.eup %730 }
 0x350   :  { %v331_v37 = vsel %vm80_vm1, %v731_v36, 0.0 }
 0x351   :  { %332 = vadd.xlane.f32.xlu0 %v331_v37 }
 0x3de   :  { %v333_v44 = vpop.xlane.xlu0 %332 }
 0x3df   :  { %732 = vrcp.f32 %v333_v44 }
 0x3e9   :  { %v733_v45 = vpop.eup %732 }
 0x3ea   :  { %v335_v46 = vmul.f32 %v733_v45, %v731_v36 }
 0x3ec   :  { %v336_v47 = vmul.f32 %v335_v46, %v908_v8 }
 0x3ee   :  { %669 = vmatmul.mubr.msk.f32.vlgmr.msra.gmra.mrb[2].mxu1 %vm80_vm1, %v336_v47 }
 0x3ef   :  { %690 = vmatprep.mubr.msk.f32.mxu1 %vm787_vm0, %v788_v1  ;;  %719 = vmatpush3.bf16.msra.mxu1 %v718_v53 }
 0x3f0   :  { %720 = vmatprep.subr.bf16.mxu1 %v786_v0 }
 0x3f3   :  { %722 = vmatpush3.bf16.msra.mxu1 %v721_v61 }
 0x4c1   :  { %v415_v55 = vpop.f32.mrb[2].mxu1 }
 0x4c2   :  { %v416_v56 = vadd.f32 %v603_v54, %v415_v55  ;;  %v670_v57 = vpop.f32.mrb[3].mxu1 }
 0x4c4   :  { %v419_v58 = vmax.f32 %v416_v56, 0.0 }
 0x4c6   :  { %680 = vmatmul.mubr.msk.f32.vlgmr.msra.gmra.mrb[4].mxu0 %vm166_vm2, %v419_v58 }
 0x599   :  { %v500_v63 = vpop.f32.mrb[4].mxu0 }
 0x59a   :  { %v501_v0 = vadd.f32 %v605_v62, %v500_v63  ;;  %v681_v1 = vpop.f32.mrb[5].mxu0 }
 0x59c   :  { %v504_v2 = vmax.f32 %v501_v0, 0.0 }
 0x59e   :  { %691 = vmatmul.mubr.msk.f32.vlgmr.msra.gmra.mrb[4].mxu1 %vm166_vm2, %v504_v2 }
 0x671   :  { %v585_v4 = vpop.f32.mrb[4].mxu1 }
 0x672   :  { %v586_v5 = vadd.f32 %v607_v3, %v585_v4  ;;  %v692_v6 = vpop.f32.mrb[5].mxu1 }
 0x674   :  { %590 = vst.msk [vmem:[%s1012_s13] sm:$0xff] %vm589_vm3, %v586_v5 }
 0x675   :  { %595 = vsyncpa [#allocation3], 1 }
 0x676   :  { %596 = vsyncpa [#allocation5], 1 }

</bundles_post_ra>
